<compile_context>
chip_gen: v5e
topology: v5e:2x2
jax: 0.10.0
libtpu: 0.0.40
codegen_flags: <defaults>
</compile_context>

<pallas_src>
import math
import functools

import jax
import jax.numpy as jnp
from jax.experimental import pallas as pl
from jax.experimental.pallas import tpu as pltpu


# --------------------------------------------------------------------------- #
# Kernel                                                                      #
# --------------------------------------------------------------------------- #
def _attention_kernel(q_ref, k_ref, v_ref,
                      wq_ref, bq_ref, wk_ref, bk_ref, wv_ref, bv_ref,
                      wo_ref, bo_ref,
                      o_ref,
                      qp_sc, m_sc, l_sc, acc_sc,
                      *, batch_tile, seq_len, kv_tile, d_k, d_model,
                      compute_dtype, approx_recip):
    """Grid: (batch tiles ["parallel"], kv tiles ["arbitrary"])."""
    kv = pl.program_id(1)

    # ---- once per batch tile: Q projection + online-softmax init ---------- #
    @pl.when(kv == 0)
    def _():
        # Big-M projection; the 1/sqrt(d_k) scale is pre-folded into wq/bq.
        qp = jnp.dot(q_ref[...], wq_ref[...],
                     preferred_element_type=jnp.float32) + bq_ref[...]
        # Reshape in f32 first (free when seq_len % 8 == 0), cast afterwards.
        qp_sc[...] = qp.reshape(batch_tile, seq_len, d_k).astype(compute_dtype)
        m_sc[...] = jnp.full(m_sc.shape, -jnp.inf, m_sc.dtype)
        l_sc[...] = jnp.zeros(l_sc.shape, l_sc.dtype)
        acc_sc[...] = jnp.zeros(acc_sc.shape, acc_sc.dtype)

    # ---- per KV tile: K/V projections as big-M matmuls -------------------- #
    k = k_ref[...].reshape(batch_tile * kv_tile, d_model)
    v = v_ref[...].reshape(batch_tile * kv_tile, d_model)
    kp = jnp.dot(k, wk_ref[...], preferred_element_type=jnp.float32) + bk_ref[...]
    vp = jnp.dot(v, wv_ref[...], preferred_element_type=jnp.float32) + bv_ref[...]
    kp = kp.reshape(batch_tile, kv_tile, d_k).astype(compute_dtype)
    vp = vp.reshape(batch_tile, kv_tile, d_k).astype(compute_dtype)

    # ---- online softmax over KV tiles (f32 statistics) --------------------- #
    qp = qp_sc[...]
    # Contraction on the last dim -> no explicit K transpose through the XLU.
    s = jnp.einsum('bqd,bkd->bqk', qp, kp,
                   preferred_element_type=jnp.float32)        # (Bt, S, kvT) f32
    m_prev = m_sc[...]
    m_new = jnp.maximum(m_prev, jnp.max(s, axis=-1, keepdims=True))
    alpha = jnp.exp(m_prev - m_new)
    p = jnp.exp(s - m_new)
    l_sc[...] = alpha * l_sc[...] + jnp.sum(p, axis=-1, keepdims=True)
    acc_sc[...] = alpha * acc_sc[...] + jnp.einsum(
        'bqk,bkd->bqd', p.astype(compute_dtype), vp,
        preferred_element_type=jnp.float32)
    m_sc[...] = m_new

    # ---- finalize: normalize + head-folded output projection --------------- #
    @pl.when(kv == pl.num_programs(1) - 1)
    def _():
        if approx_recip:
            inv_l = pl.reciprocal(l_sc[...], approx=True)      # EUP slot
        else:
            inv_l = 1.0 / l_sc[...]
        attn = (acc_sc[...] * inv_l).reshape(batch_tile * seq_len, d_k)
        out = jnp.dot(attn.astype(compute_dtype), wo_ref[...],
                      preferred_element_type=jnp.float32) + bo_ref[...]
        o_ref[...] = out.astype(o_ref.dtype)


# --------------------------------------------------------------------------- #
# Tiling / VMEM heuristics                                                    #
# --------------------------------------------------------------------------- #
def _round_up(x, m):
    return ((x + m - 1) // m) * m


def _vmem_capacity_bytes():
    try:
        cap = int(pltpu.get_tpu_info().vmem_capacity_bytes)
        if cap > 0:
            return cap
    except Exception:
        pass
    return 64 * 1024 * 1024   # conservative default (v7x per-TensorCore)


def _vmem_estimate(batch_tile, seq_len, kv_tile, d_model, d_k,
                   in_bytes, out_bytes, w_bytes, cdt_bytes):
    rows = batch_tile * seq_len
    kv_rows = batch_tile * kv_tile
    dm = _round_up(d_model, 128)
    dk = _round_up(d_k, 128)
    sq = _round_up(seq_len, 8)
    kt = _round_up(kv_tile, 128)
    est = 0
    est += 2 * rows * dm * in_bytes                   # Q slab (double-buffered)
    est += 2 * 2 * kv_rows * dm * in_bytes            # K, V tiles (double-buffered)
    est += 2 * rows * dm * out_bytes                  # output slab (double-buffered)
    est += (3 * d_model * dk + d_k * dm) * w_bytes    # weights (single-buffered)
    est += (3 * dk + dm) * 4                          # biases (f32)
    est += batch_tile * sq * dk * cdt_bytes           # qp scratch
    est += batch_tile * sq * dk * 4                   # acc scratch (f32)
    est += 2 * batch_tile * sq * 128 * 4              # m, l scratch (lane-padded)
    est += 3 * batch_tile * sq * kt * 4               # transient scores / p tiles
    est += 2 * kv_rows * dk * 4                       # transient kp / vp (f32)
    return est


def _pick_tiles(B, seq_len, d_model, d_k, in_bytes, out_bytes, w_bytes,
                cdt_bytes, vmem_budget, *, sublane=8, target_rows=512,
                kv_cap=512):
    """VMEM-aware (batch_tile, kv_tile) choice; keeps grid>=2 on the batch axis."""
    # KV tile: whole sequence when small, else the largest sublane-aligned
    # divisor of S that is <= kv_cap.
    if seq_len <= kv_cap:
        kv_tile = seq_len
    else:
        kv_tile = None
        start = (min(kv_cap, seq_len) // sublane) * sublane
        for t in range(start, sublane - 1, -sublane):
            if seq_len % t == 0:
                kv_tile = t
                break
        if kv_tile is None:
            # TODO(synk): masked ragged last KV tile for non-divisible seq_len.
            kv_tile = seq_len

    # Batch tile: divisor of B, capped at B//2 (v7x megacore) and by VMEM.
    max_bt = B if B < 2 else max(1, B // 2)
    batch_tile = 1
    for d in range(1, max_bt + 1):
        if B % d:
            continue
        est = _vmem_estimate(d, seq_len, kv_tile, d_model, d_k,
                             in_bytes, out_bytes, w_bytes, cdt_bytes)
        if est > vmem_budget:
            break
        batch_tile = d
        if d * seq_len >= target_rows:
            break
    return batch_tile, kv_tile


def _const_spec(shape):
    """Constant-index (fetched-once) operand; single pipeline buffer."""
    idx = lambda *_: (0,) * len(shape)
    try:
        return pl.BlockSpec(shape, idx, pipeline_mode=pl.Buffered(1))
    except TypeError:   # older API without pipeline_mode
        return pl.BlockSpec(shape, idx)


# --------------------------------------------------------------------------- #
# Wrapper                                                                     #
# --------------------------------------------------------------------------- #
def attention_forward(Q, K, V, params, *, num_heads, use_bf16=True,
                      approx_recip=True, batch_tile=None, kv_tile=None,
                      out_dtype=None):
    B, S, d_model = Q.shape
    assert d_model % num_heads == 0
    d_k = d_model // num_heads
    if out_dtype is None:
        out_dtype = Q.dtype
    wq, bq, wk, bk, wv, bv, wo, bo = params

    # Exact algebraic pre-folds (done once, outside the kernel):
    scale = 1.0 / math.sqrt(d_k)
    wq_s = wq.astype(jnp.float32) * scale
    bq_s = bq.astype(jnp.float32) * scale
    # concat([attn]*H, -1) @ wo  ==  attn @ sum_h wo[h*d_k:(h+1)*d_k, :]
    wo_f = wo.astype(jnp.float32).reshape(num_heads, d_k, d_model).sum(axis=0)

    # MXU operand dtype for all post-projection matmuls (f32 accumulation).
    cdt = jnp.bfloat16 if use_bf16 else jnp.float32

    # Provisional slab dtype (bf16 DMA needs (16,128)-friendly block dims).
    slab_bf16 = bool(use_bf16 and S % 16 == 0)
    sublane = 16 if slab_bf16 else 8
    in_bytes = 2 if slab_bf16 else 4
    out_bytes = jnp.dtype(out_dtype).itemsize
    cdt_bytes = jnp.dtype(cdt).itemsize

    vmem_cap = _vmem_capacity_bytes()
    vmem_budget = (3 * vmem_cap) // 4       # ~48 MiB on v7x, ~96 MiB on v5e/v6e

    auto_bt, auto_kv = _pick_tiles(B, S, d_model, d_k, in_bytes, out_bytes,
                                   in_bytes, cdt_bytes, vmem_budget,
                                   sublane=sublane)
    if batch_tile is None:
        batch_tile = auto_bt
    if kv_tile is None:
        kv_tile = auto_kv
    assert B % batch_tile == 0, "batch_tile must divide the batch size"
    assert S % kv_tile == 0, "kv_tile must divide the sequence length"
    num_kv = S // kv_tile
    rows = batch_tile * S
    grid = (B // batch_tile, num_kv)

    # Final slab-dtype decision against the actual block shapes.
    slab_bf16 = bool(use_bf16 and
                     (rows % 16 == 0 or rows == B * S) and
                     (kv_tile % 16 == 0 or kv_tile == S))
    in_dtype = jnp.bfloat16 if slab_bf16 else jnp.float32
    in_bytes = jnp.dtype(in_dtype).itemsize

    est = _vmem_estimate(batch_tile, S, kv_tile, d_model, d_k,
                         in_bytes, out_bytes, in_bytes, cdt_bytes)
    vmem_limit = max(est * 3 // 2 + (4 << 20), 32 << 20)
    vmem_limit = int(min(vmem_limit, vmem_cap - (8 << 20)))

    # Operand preparation (biases stay f32: they add to f32 accumulators).
    q2 = Q.reshape(B * S, d_model).astype(in_dtype)
    k3 = K.astype(in_dtype)
    v3 = V.astype(in_dtype)
    wq_c = wq_s.astype(in_dtype)
    wk_c = wk.astype(in_dtype)
    wv_c = wv.astype(in_dtype)
    wo_c = wo_f.astype(cdt)
    bq_c = bq_s.astype(jnp.float32)
    bk_c = bk.astype(jnp.float32)
    bv_c = bv.astype(jnp.float32)
    bo_c = bo.astype(jnp.float32)

    kernel = functools.partial(
        _attention_kernel, batch_tile=batch_tile, seq_len=S, kv_tile=kv_tile,
        d_k=d_k, d_model=d_model, compute_dtype=cdt, approx_recip=approx_recip)

    q_spec = pl.BlockSpec((rows, d_model), lambda b, kv: (b, 0))
    kv_spec = pl.BlockSpec((batch_tile, kv_tile, d_model),
                           lambda b, kv: (b, kv, 0))
    o_spec = pl.BlockSpec((rows, d_model), lambda b, kv: (b, 0))
    w_qkv = _const_spec((d_model, d_k))
    b_qkv = _const_spec((1, d_k))
    w_out = _const_spec((d_k, d_model))
    b_out = _const_spec((1, d_model))

    out2 = pl.pallas_call(
        kernel,
        out_shape=jax.ShapeDtypeStruct((B * S, d_model), out_dtype),
        grid_spec=pltpu.PrefetchScalarGridSpec(
            num_scalar_prefetch=0,
            grid=grid,
            in_specs=[q_spec, kv_spec, kv_spec,
                      w_qkv, b_qkv, w_qkv, b_qkv, w_qkv, b_qkv,
                      w_out, b_out],
            out_specs=o_spec,
            scratch_shapes=[
                pltpu.VMEM((batch_tile, S, d_k), cdt),          # qp
                pltpu.VMEM((batch_tile, S, 1), jnp.float32),    # m (running max)
                pltpu.VMEM((batch_tile, S, 1), jnp.float32),    # l (running sum)
                pltpu.VMEM((batch_tile, S, d_k), jnp.float32),  # acc
            ]),
        compiler_params=pltpu.CompilerParams(
            dimension_semantics=("parallel", "arbitrary"),
            vmem_limit_bytes=vmem_limit),
    )(q2, k3, v3, wq_c, bq_c, wk_c, bk_c, wv_c, bv_c, wo_c, bo_c)

    return out2.reshape(B, S, d_model)


# --------------------------------------------------------------------------- #
# Parameters / pure-JAX reference                                             #
# --------------------------------------------------------------------------- #
def init_params(key, d_model, num_heads, dtype=jnp.float32):
    d_k = d_model // num_heads
    keys = jax.random.split(key, 8)

    def lin(kw, kb, fan_in, fan_out):
        bound = 1.0 / math.sqrt(fan_in)
        w = jax.random.uniform(kw, (fan_in, fan_out), dtype, -bound, bound)
        b = jax.random.uniform(kb, (1, fan_out), dtype, -bound, bound)
        return w, b

    wq, bq = lin(keys[0], keys[1], d_model, d_k)
    wk, bk = lin(keys[2], keys[3], d_model, d_k)
    wv, bv = lin(keys[4], keys[5], d_model, d_k)
    wo, bo = lin(keys[6], keys[7], num_heads * d_k, d_model)
    return (wq, bq, wk, bk, wv, bv, wo, bo)


def attention_reference(Q, K, V, params, *, num_heads):
    """Pure-JAX reference matching the PyTorch forward (un-folded params)."""
    wq, bq, wk, bk, wv, bv, wo, bo = params
    d_k = wq.shape[1]
    qp = Q @ wq + bq
    kp = K @ wk + bk
    vp = V @ wv + bv
    scores = jnp.einsum("bqd,bkd->bqk", qp, kp) / math.sqrt(d_k)
    p = jax.nn.softmax(scores, axis=-1)
    attn = jnp.einsum("bqk,bkd->bqd", p, vp)
    concat = jnp.concatenate([attn] * num_heads, axis=-1)
    return concat @ wo + bo


# --------------------------------------------------------------------------- #
# Demo / checks                                                               #
# --------------------------------------------------------------------------- #
if __name__ == "__main__":
    # Small, module-consistent shapes (lane-dense d_model): batch=2, seq=16,
    # d_model=128, heads=8 (d_k=16).
    B, S, d_model, num_heads = 2, 16, 128, 8
    key = jax.random.PRNGKey(0)
    kq, kk, kv_, kp_ = jax.random.split(key, 4)

    Q = jax.random.normal(kq, (B, S, d_model), jnp.float32)
    K = jax.random.normal(kk, (B, S, d_model), jnp.float32)
    V = jax.random.normal(kv_, (B, S, d_model), jnp.float32)
    params = init_params(kp_, d_model, num_heads)

    ref = attention_reference(Q, K, V, params, num_heads=num_heads)

    # Default fast path: bf16 slabs + bf16 MXU operands, f32 accumulation and
    # f32 softmax, approx EUP reciprocal.
    out = attention_forward(Q, K, V, params, num_heads=num_heads)
    out = jax.block_until_ready(out)
    assert out.shape == (B, S, d_model)
    assert jnp.allclose(out, ref, atol=5e-2, rtol=5e-2), "bf16 mismatch vs reference"

    # Full-f32 accuracy path (exact reciprocal): tight tolerance vs reference.
    out_f32 = attention_forward(Q, K, V, params, num_heads=num_heads,
                                use_bf16=False, approx_recip=False)
    out_f32 = jax.block_until_ready(out_f32)
    assert jnp.allclose(out_f32, ref, atol=1e-3, rtol=1e-3), "f32 mismatch vs reference"

    # Flash-tiled KV path: multiple KV grid steps with online softmax.
    S2 = 32
    kq2, kk2, kv2 = jax.random.split(jax.random.PRNGKey(1), 3)
    Q2 = jax.random.normal(kq2, (B, S2, d_model), jnp.float32)
    K2 = jax.random.normal(kk2, (B, S2, d_model), jnp.float32)
    V2 = jax.random.normal(kv2, (B, S2, d_model), jnp.float32)
    ref2 = attention_reference(Q2, K2, V2, params, num_heads=num_heads)
    out2 = attention_forward(Q2, K2, V2, params, num_heads=num_heads,
                             use_bf16=False, approx_recip=False, kv_tile=8)
    out2 = jax.block_until_ready(out2)
    assert jnp.allclose(out2, ref2, atol=1e-3, rtol=1e-3), "flash-KV mismatch vs reference"

    print("KERNEL_OK")
</pallas_src>

<mosaic_0001>
module attributes {stable_mosaic.version = 11 : i64} {
  func.func @_attention_kernel(%arg0: i32, %arg1: i32, %arg2: memref<16x128xbf16, #tpu.memory_space<vmem>>, %arg3: memref<1x16x128xbf16, #tpu.memory_space<vmem>>, %arg4: memref<1x16x128xbf16, #tpu.memory_space<vmem>>, %arg5: memref<128x16xbf16, #tpu.memory_space<vmem>>, %arg6: memref<1x16xf32, #tpu.memory_space<vmem>>, %arg7: memref<128x16xbf16, #tpu.memory_space<vmem>>, %arg8: memref<1x16xf32, #tpu.memory_space<vmem>>, %arg9: memref<128x16xbf16, #tpu.memory_space<vmem>>, %arg10: memref<1x16xf32, #tpu.memory_space<vmem>>, %arg11: memref<16x128xbf16, #tpu.memory_space<vmem>>, %arg12: memref<1x128xf32, #tpu.memory_space<vmem>>, %arg13: memref<16x128xf32, #tpu.memory_space<vmem>>, %arg14: memref<1x16x16xbf16, #tpu.memory_space<vmem>>, %arg15: memref<1x16x1xf32, #tpu.memory_space<vmem>>, %arg16: memref<1x16x1xf32, #tpu.memory_space<vmem>>, %arg17: memref<1x16x16xf32, #tpu.memory_space<vmem>>) attributes {dimension_semantics = [#tpu.dimension_semantics<parallel>, #tpu.dimension_semantics<arbitrary>], iteration_bounds = array<i64: 2, 1>, scalar_prefetch = 0 : i64, scratch_operands = 4 : i64, tpu.core_type = #tpu.core_type<tc>, window_params = [{transform_indices = @transform_0, window_bounds = array<i64: 16, 128>}, {transform_indices = @transform_1, window_bounds = array<i64: 1, 16, 128>}, {transform_indices = @transform_2, window_bounds = array<i64: 1, 16, 128>}, {pipeline_mode = #tpu.pipeline_mode<synchronous>, transform_indices = @transform_3, window_bounds = array<i64: 128, 16>}, {pipeline_mode = #tpu.pipeline_mode<synchronous>, transform_indices = @transform_4, window_bounds = array<i64: 1, 16>}, {pipeline_mode = #tpu.pipeline_mode<synchronous>, transform_indices = @transform_5, window_bounds = array<i64: 128, 16>}, {pipeline_mode = #tpu.pipeline_mode<synchronous>, transform_indices = @transform_6, window_bounds = array<i64: 1, 16>}, {pipeline_mode = #tpu.pipeline_mode<synchronous>, transform_indices = @transform_7, window_bounds = array<i64: 128, 16>}, {pipeline_mode = #tpu.pipeline_mode<synchronous>, transform_indices = @transform_8, window_bounds = array<i64: 1, 16>}, {pipeline_mode = #tpu.pipeline_mode<synchronous>, transform_indices = @transform_9, window_bounds = array<i64: 16, 128>}, {pipeline_mode = #tpu.pipeline_mode<synchronous>, transform_indices = @transform_10, window_bounds = array<i64: 1, 128>}, {transform_indices = @transform_11, window_bounds = array<i64: 16, 128>}]} {
    %c0_i32 = arith.constant 0 : i32
    %0 = arith.cmpi eq, %arg1, %c0_i32 : i32
    %1 = arith.extui %0 : i1 to i32
    %c0_i32_0 = arith.constant 0 : i32
    %2 = arith.cmpi ne, %1, %c0_i32_0 : i32
    scf.if %2 {
      %c0_42 = arith.constant 0 : index
      %c0_43 = arith.constant 0 : index
      %49 = vector.load %arg2[%c0_42, %c0_43] : memref<16x128xbf16, #tpu.memory_space<vmem>>, vector<16x128xbf16>
      %c0_44 = arith.constant 0 : index
      %c0_45 = arith.constant 0 : index
      %50 = vector.load %arg5[%c0_44, %c0_45] : memref<128x16xbf16, #tpu.memory_space<vmem>>, vector<128x16xbf16>
      %cst_46 = arith.constant dense<0.000000e+00> : vector<16x16xf32>
      %51 = tpu.matmul %49, %50, %cst_46 {dimension_numbers = #tpu.dot_dimension_numbers<[1], [0], [0], [1], [0, 0, 1, 1], [], []>} : vector<16x128xbf16>, vector<128x16xbf16>, vector<16x16xf32> -> vector<16x16xf32>
      %c0_47 = arith.constant 0 : index
      %c0_48 = arith.constant 0 : index
      %52 = vector.load %arg6[%c0_47, %c0_48] : memref<1x16xf32, #tpu.memory_space<vmem>>, vector<1x16xf32>
      %53 = vector.broadcast %52 : vector<1x16xf32> to vector<16x16xf32>
      %54 = arith.addf %51, %53 : vector<16x16xf32>
      %55 = vector.shape_cast %54 : vector<16x16xf32> to vector<1x16x16xf32>
      %56 = arith.truncf %55 : vector<1x16x16xf32> to vector<1x16x16xbf16>
      %c0_49 = arith.constant 0 : index
      %c0_50 = arith.constant 0 : index
      %c0_51 = arith.constant 0 : index
      %57 = vector.load %arg14[%c0_49, %c0_50, %c0_51] : memref<1x16x16xbf16, #tpu.memory_space<vmem>>, vector<1x16x16xbf16>
      tpu.vector_store %arg14[%c0_49, %c0_50, %c0_51], %56 {strides = array<i32>} : memref<1x16x16xbf16, #tpu.memory_space<vmem>>, vector<1x16x16xbf16>,
      %cst_52 = arith.constant 0xFF800000 : f32
      %58 = vector.broadcast %cst_52 : f32 to vector<1x16x1xf32>
      %c0_53 = arith.constant 0 : index
      %c0_54 = arith.constant 0 : index
      %c0_55 = arith.constant 0 : index
      %59 = vector.load %arg15[%c0_53, %c0_54, %c0_55] : memref<1x16x1xf32, #tpu.memory_space<vmem>>, vector<1x16x1xf32>
      tpu.vector_store %arg15[%c0_53, %c0_54, %c0_55], %58 {strides = array<i32>} : memref<1x16x1xf32, #tpu.memory_space<vmem>>, vector<1x16x1xf32>,
      %cst_56 = arith.constant 0.000000e+00 : f32
      %60 = vector.broadcast %cst_56 : f32 to vector<1x16x1xf32>
      %c0_57 = arith.constant 0 : index
      %c0_58 = arith.constant 0 : index
      %c0_59 = arith.constant 0 : index
      %61 = vector.load %arg16[%c0_57, %c0_58, %c0_59] : memref<1x16x1xf32, #tpu.memory_space<vmem>>, vector<1x16x1xf32>
      tpu.vector_store %arg16[%c0_57, %c0_58, %c0_59], %60 {strides = array<i32>} : memref<1x16x1xf32, #tpu.memory_space<vmem>>, vector<1x16x1xf32>,
      %cst_60 = arith.constant 0.000000e+00 : f32
      %62 = vector.broadcast %cst_60 : f32 to vector<1x16x16xf32>
      %c0_61 = arith.constant 0 : index
      %c0_62 = arith.constant 0 : index
      %c0_63 = arith.constant 0 : index
      %63 = vector.load %arg17[%c0_61, %c0_62, %c0_63] : memref<1x16x16xf32, #tpu.memory_space<vmem>>, vector<1x16x16xf32>
      tpu.vector_store %arg17[%c0_61, %c0_62, %c0_63], %62 {strides = array<i32>} : memref<1x16x16xf32, #tpu.memory_space<vmem>>, vector<1x16x16xf32>,
    } else {
    }
    %c0 = arith.constant 0 : index
    %c0_1 = arith.constant 0 : index
    %c0_2 = arith.constant 0 : index
    %3 = vector.load %arg3[%c0, %c0_1, %c0_2] : memref<1x16x128xbf16, #tpu.memory_space<vmem>>, vector<1x16x128xbf16>
    %4 = vector.shape_cast %3 : vector<1x16x128xbf16> to vector<16x128xbf16>
    %c0_3 = arith.constant 0 : index
    %c0_4 = arith.constant 0 : index
    %c0_5 = arith.constant 0 : index
    %5 = vector.load %arg4[%c0_3, %c0_4, %c0_5] : memref<1x16x128xbf16, #tpu.memory_space<vmem>>, vector<1x16x128xbf16>
    %6 = vector.shape_cast %5 : vector<1x16x128xbf16> to vector<16x128xbf16>
    %c0_6 = arith.constant 0 : index
    %c0_7 = arith.constant 0 : index
    %7 = vector.load %arg7[%c0_6, %c0_7] : memref<128x16xbf16, #tpu.memory_space<vmem>>, vector<128x16xbf16>
    %cst = arith.constant dense<0.000000e+00> : vector<16x16xf32>
    %8 = tpu.matmul %4, %7, %cst {dimension_numbers = #tpu.dot_dimension_numbers<[1], [0], [0], [1], [0, 0, 1, 1], [], []>} : vector<16x128xbf16>, vector<128x16xbf16>, vector<16x16xf32> -> vector<16x16xf32>
    %c0_8 = arith.constant 0 : index
    %c0_9 = arith.constant 0 : index
    %9 = vector.load %arg8[%c0_8, %c0_9] : memref<1x16xf32, #tpu.memory_space<vmem>>, vector<1x16xf32>
    %10 = vector.broadcast %9 : vector<1x16xf32> to vector<16x16xf32>
    %11 = arith.addf %8, %10 : vector<16x16xf32>
    %c0_10 = arith.constant 0 : index
    %c0_11 = arith.constant 0 : index
    %12 = vector.load %arg9[%c0_10, %c0_11] : memref<128x16xbf16, #tpu.memory_space<vmem>>, vector<128x16xbf16>
    %cst_12 = arith.constant dense<0.000000e+00> : vector<16x16xf32>
    %13 = tpu.matmul %6, %12, %cst_12 {dimension_numbers = #tpu.dot_dimension_numbers<[1], [0], [0], [1], [0, 0, 1, 1], [], []>} : vector<16x128xbf16>, vector<128x16xbf16>, vector<16x16xf32> -> vector<16x16xf32>
    %c0_13 = arith.constant 0 : index
    %c0_14 = arith.constant 0 : index
    %14 = vector.load %arg10[%c0_13, %c0_14] : memref<1x16xf32, #tpu.memory_space<vmem>>, vector<1x16xf32>
    %15 = vector.broadcast %14 : vector<1x16xf32> to vector<16x16xf32>
    %16 = arith.addf %13, %15 : vector<16x16xf32>
    %17 = vector.shape_cast %11 : vector<16x16xf32> to vector<1x16x16xf32>
    %18 = arith.truncf %17 : vector<1x16x16xf32> to vector<1x16x16xbf16>
    %19 = vector.shape_cast %16 : vector<16x16xf32> to vector<1x16x16xf32>
    %20 = arith.truncf %19 : vector<1x16x16xf32> to vector<1x16x16xbf16>
    %c0_15 = arith.constant 0 : index
    %c0_16 = arith.constant 0 : index
    %c0_17 = arith.constant 0 : index
    %21 = vector.load %arg14[%c0_15, %c0_16, %c0_17] : memref<1x16x16xbf16, #tpu.memory_space<vmem>>, vector<1x16x16xbf16>
    "tpu.trace_start"() <{level = 10 : i32, message = "bqd,bkd->bqk"}> : () -> ()
    %cst_18 = arith.constant dense<0.000000e+00> : vector<1x16x16xf32>
    %22 = tpu.matmul %21, %18, %cst_18 {dimension_numbers = #tpu.dot_dimension_numbers<[2], [2], [1], [1], [0, 0, 0, 1, 1, 1], [0], [0]>} : vector<1x16x16xbf16>, vector<1x16x16xbf16>, vector<1x16x16xf32> -> vector<1x16x16xf32>
    "tpu.trace_stop"() : () -> ()
    %c0_19 = arith.constant 0 : index
    %c0_20 = arith.constant 0 : index
    %c0_21 = arith.constant 0 : index
    %23 = vector.load %arg15[%c0_19, %c0_20, %c0_21] : memref<1x16x1xf32, #tpu.memory_space<vmem>>, vector<1x16x1xf32>
    %cst_22 = arith.constant dense<0xFF800000> : vector<1x16xf32>
    %24 = vector.multi_reduction <maximumf>, %22, %cst_22 [2] : vector<1x16x16xf32> to vector<1x16xf32>
    %25 = vector.shape_cast %24 : vector<1x16xf32> to vector<1x16x1xf32>
    %26 = arith.maximumf %23, %25 : vector<1x16x1xf32>
    %27 = arith.subf %23, %26 : vector<1x16x1xf32>
    %28 = math.exp %27 : vector<1x16x1xf32>
    %29 = vector.broadcast %26 : vector<1x16x1xf32> to vector<1x16x16xf32>
    %30 = arith.subf %22, %29 : vector<1x16x16xf32>
    %31 = math.exp %30 : vector<1x16x16xf32>
    %c0_23 = arith.constant 0 : index
    %c0_24 = arith.constant 0 : index
    %c0_25 = arith.constant 0 : index
    %32 = vector.load %arg16[%c0_23, %c0_24, %c0_25] : memref<1x16x1xf32, #tpu.memory_space<vmem>>, vector<1x16x1xf32>
    %33 = arith.mulf %28, %32 : vector<1x16x1xf32>
    %cst_26 = arith.constant dense<0.000000e+00> : vector<1x16xf32>
    %34 = vector.multi_reduction <add>, %31, %cst_26 [2] : vector<1x16x16xf32> to vector<1x16xf32>
    %35 = vector.shape_cast %34 : vector<1x16xf32> to vector<1x16x1xf32>
    %36 = arith.addf %33, %35 : vector<1x16x1xf32>
    %c0_27 = arith.constant 0 : index
    %c0_28 = arith.constant 0 : index
    %c0_29 = arith.constant 0 : index
    %37 = vector.load %arg16[%c0_27, %c0_28, %c0_29] : memref<1x16x1xf32, #tpu.memory_space<vmem>>, vector<1x16x1xf32>
    tpu.vector_store %arg16[%c0_27, %c0_28, %c0_29], %36 {strides = array<i32>} : memref<1x16x1xf32, #tpu.memory_space<vmem>>, vector<1x16x1xf32>,
    %c0_30 = arith.constant 0 : index
    %c0_31 = arith.constant 0 : index
    %c0_32 = arith.constant 0 : index
    %38 = vector.load %arg17[%c0_30, %c0_31, %c0_32] : memref<1x16x16xf32, #tpu.memory_space<vmem>>, vector<1x16x16xf32>
    %39 = vector.broadcast %28 : vector<1x16x1xf32> to vector<1x16x16xf32>
    %40 = arith.mulf %39, %38 : vector<1x16x16xf32>
    %41 = arith.truncf %31 : vector<1x16x16xf32> to vector<1x16x16xbf16>
    "tpu.trace_start"() <{level = 10 : i32, message = "bqk,bkd->bqd"}> : () -> ()
    %cst_33 = arith.constant dense<0.000000e+00> : vector<1x16x16xf32>
    %42 = tpu.matmul %41, %20, %cst_33 {dimension_numbers = #tpu.dot_dimension_numbers<[2], [1], [1], [2], [0, 0, 0, 1, 1, 2], [0], [0]>} : vector<1x16x16xbf16>, vector<1x16x16xbf16>, vector<1x16x16xf32> -> vector<1x16x16xf32>
    "tpu.trace_stop"() : () -> ()
    %43 = arith.addf %40, %42 : vector<1x16x16xf32>
    %c0_34 = arith.constant 0 : index
    %c0_35 = arith.constant 0 : index
    %c0_36 = arith.constant 0 : index
    %44 = vector.load %arg17[%c0_34, %c0_35, %c0_36] : memref<1x16x16xf32, #tpu.memory_space<vmem>>, vector<1x16x16xf32>
    tpu.vector_store %arg17[%c0_34, %c0_35, %c0_36], %43 {strides = array<i32>} : memref<1x16x16xf32, #tpu.memory_space<vmem>>, vector<1x16x16xf32>,
    %c0_37 = arith.constant 0 : index
    %c0_38 = arith.constant 0 : index
    %c0_39 = arith.constant 0 : index
    %45 = vector.load %arg15[%c0_37, %c0_38, %c0_39] : memref<1x16x1xf32, #tpu.memory_space<vmem>>, vector<1x16x1xf32>
    tpu.vector_store %arg15[%c0_37, %c0_38, %c0_39], %26 {strides = array<i32>} : memref<1x16x1xf32, #tpu.memory_space<vmem>>, vector<1x16x1xf32>,
    %c0_i32_40 = arith.constant 0 : i32
    %46 = arith.cmpi eq, %arg1, %c0_i32_40 : i32
    %47 = arith.extui %46 : i1 to i32
    %c0_i32_41 = arith.constant 0 : i32
    %48 = arith.cmpi ne, %47, %c0_i32_41 : i32
    scf.if %48 {
      %c0_42 = arith.constant 0 : index
      %c0_43 = arith.constant 0 : index
      %c0_44 = arith.constant 0 : index
      %49 = vector.load %arg16[%c0_42, %c0_43, %c0_44] : memref<1x16x1xf32, #tpu.memory_space<vmem>>, vector<1x16x1xf32>
      %50 = tpu.reciprocal %49 {approx = true} : vector<1x16x1xf32> -> vector<1x16x1xf32>
      %c0_45 = arith.constant 0 : index
      %c0_46 = arith.constant 0 : index
      %c0_47 = arith.constant 0 : index
      %51 = vector.load %arg17[%c0_45, %c0_46, %c0_47] : memref<1x16x16xf32, #tpu.memory_space<vmem>>, vector<1x16x16xf32>
      %52 = vector.broadcast %50 : vector<1x16x1xf32> to vector<1x16x16xf32>
      %53 = arith.mulf %51, %52 : vector<1x16x16xf32>
      %54 = vector.shape_cast %53 : vector<1x16x16xf32> to vector<16x16xf32>
      %55 = arith.truncf %54 : vector<16x16xf32> to vector<16x16xbf16>
      %c0_48 = arith.constant 0 : index
      %c0_49 = arith.constant 0 : index
      %56 = vector.load %arg11[%c0_48, %c0_49] : memref<16x128xbf16, #tpu.memory_space<vmem>>, vector<16x128xbf16>
      %cst_50 = arith.constant dense<0.000000e+00> : vector<16x128xf32>
      %57 = tpu.matmul %55, %56, %cst_50 {dimension_numbers = #tpu.dot_dimension_numbers<[1], [0], [0], [1], [0, 0, 1, 1], [], []>} : vector<16x16xbf16>, vector<16x128xbf16>, vector<16x128xf32> -> vector<16x128xf32>
      %c0_51 = arith.constant 0 : index
      %c0_52 = arith.constant 0 : index
      %58 = vector.load %arg12[%c0_51, %c0_52] : memref<1x128xf32, #tpu.memory_space<vmem>>, vector<1x128xf32>
      %59 = vector.broadcast %58 : vector<1x128xf32> to vector<16x128xf32>
      %60 = arith.addf %57, %59 : vector<16x128xf32>
      %c0_53 = arith.constant 0 : index
      %c0_54 = arith.constant 0 : index
      %61 = vector.load %arg13[%c0_53, %c0_54] : memref<16x128xf32, #tpu.memory_space<vmem>>, vector<16x128xf32>
      tpu.vector_store %arg13[%c0_53, %c0_54], %60 {strides = array<i32>} : memref<16x128xf32, #tpu.memory_space<vmem>>, vector<16x128xf32>,
    } else {
    }
    return
  }
  func.func @transform_0(%arg0: i32, %arg1: i32) -> (i32, i32) {
    %c0_i32 = arith.constant 0 : i32
    %c0_i32_0 = arith.constant 0 : i32
    return %arg0, %c0_i32 : i32, i32
  }
  func.func @transform_1(%arg0: i32, %arg1: i32) -> (i32, i32, i32) {
    %c0_i32 = arith.constant 0 : i32
    %c0_i32_0 = arith.constant 0 : i32
    return %arg0, %arg1, %c0_i32 : i32, i32, i32
  }
  func.func @transform_2(%arg0: i32, %arg1: i32) -> (i32, i32, i32) {
    %c0_i32 = arith.constant 0 : i32
    %c0_i32_0 = arith.constant 0 : i32
    return %arg0, %arg1, %c0_i32 : i32, i32, i32
  }
  func.func @transform_3(%arg0: i32, %arg1: i32) -> (i32, i32) {
    %c0_i32 = arith.constant 0 : i32
    %c0_i32_0 = arith.constant 0 : i32
    %c0_i32_1 = arith.constant 0 : i32
    return %c0_i32, %c0_i32_0 : i32, i32
  }
  func.func @transform_4(%arg0: i32, %arg1: i32) -> (i32, i32) {
    %c0_i32 = arith.constant 0 : i32
    %c0_i32_0 = arith.constant 0 : i32
    %c0_i32_1 = arith.constant 0 : i32
    return %c0_i32, %c0_i32_0 : i32, i32
  }
  func.func @transform_5(%arg0: i32, %arg1: i32) -> (i32, i32) {
    %c0_i32 = arith.constant 0 : i32
    %c0_i32_0 = arith.constant 0 : i32
    %c0_i32_1 = arith.constant 0 : i32
    return %c0_i32, %c0_i32_0 : i32, i32
  }
  func.func @transform_6(%arg0: i32, %arg1: i32) -> (i32, i32) {
    %c0_i32 = arith.constant 0 : i32
    %c0_i32_0 = arith.constant 0 : i32
    %c0_i32_1 = arith.constant 0 : i32
    return %c0_i32, %c0_i32_0 : i32, i32
  }
  func.func @transform_7(%arg0: i32, %arg1: i32) -> (i32, i32) {
    %c0_i32 = arith.constant 0 : i32
    %c0_i32_0 = arith.constant 0 : i32
    %c0_i32_1 = arith.constant 0 : i32
    return %c0_i32, %c0_i32_0 : i32, i32
  }
  func.func @transform_8(%arg0: i32, %arg1: i32) -> (i32, i32) {
    %c0_i32 = arith.constant 0 : i32
    %c0_i32_0 = arith.constant 0 : i32
    %c0_i32_1 = arith.constant 0 : i32
    return %c0_i32, %c0_i32_0 : i32, i32
  }
  func.func @transform_9(%arg0: i32, %arg1: i32) -> (i32, i32) {
    %c0_i32 = arith.constant 0 : i32
    %c0_i32_0 = arith.constant 0 : i32
    %c0_i32_1 = arith.constant 0 : i32
    return %c0_i32, %c0_i32_0 : i32, i32
  }
  func.func @transform_10(%arg0: i32, %arg1: i32) -> (i32, i32) {
    %c0_i32 = arith.constant 0 : i32
    %c0_i32_0 = arith.constant 0 : i32
    %c0_i32_1 = arith.constant 0 : i32
    return %c0_i32, %c0_i32_0 : i32, i32
  }
  func.func @transform_11(%arg0: i32, %arg1: i32) -> (i32, i32) {
    %c0_i32 = arith.constant 0 : i32
    %c0_i32_0 = arith.constant 0 : i32
    return %arg0, %c0_i32 : i32, i32
  }
}

</mosaic_0001>

<bundles_post_ra>
// kernel: tpu_custom_call.1
= control target key start
LH: loop header
LB: loop body
LE: loop exit
PB: predicated region body
PF: predicated region fallthrough
CT: control target
= control target key end

     0   :  { %16 = vsyncpa [#allocation7], 0  ;;  %s1679_s0 = inlined_call_operand.vmem [shape: bf16[32,128], index: 0, kind: input, shape index: {}]   ;;  %s1680_s1 = inlined_call_operand.vmem [shape: bf16[2,16,128], index: 1, kind: input, shape index: {}]   ;;  %s1681_s2 = inlined_call_operand.vmem [shape: bf16[2,16,128], index: 2, kind: input, shape index: {}]   ;;  %s1682_s3 = inlined_call_operand.vmem [shape: bf16[128,16], index: 3, kind: input, shape index: {}]   ;;  %s1683_s4 = inlined_call_operand.vmem [shape: f32[1,16], index: 4, kind: input, shape index: {}]   ;;  %s1684_s5 = inlined_call_operand.vmem [shape: bf16[128,16], index: 5, kind: input, shape index: {}]   ;;  %s1685_s6 = inlined_call_operand.vmem [shape: f32[1,16], index: 6, kind: input, shape index: {}]   ;;  %s1686_s7 = inlined_call_operand.vmem [shape: bf16[128,16], index: 7, kind: input, shape index: {}]   ;;  %s1687_s8 = inlined_call_operand.vmem [shape: f32[1,16], index: 8, kind: input, shape index: {}]   ;;  %s1688_s9 = inlined_call_operand.vmem [shape: bf16[16,128], index: 9, kind: input, shape index: {}]   ;;  %s1689_s10 = inlined_call_operand.vmem [shape: f32[1,128], index: 10, kind: input, shape index: {}]   ;;  %s1690_s11 = inlined_call_operand.hbm [shape: f32[32,128], index: 11, kind: output, shape index: {}]  }
   0x1   :  { %18 = vsyncpa [#allocation7 + $0x1], 0  ;;  %s1461_s17 = smov 0   ;;  %s1463_s18 = smov 0  }
   0x2   :  { %s1465_s19 = smov 0   ;;  %s1467_s20 = smov 0  }
   0x3   :  { %s1469_s21 = smov 0   ;;  %s1471_s22 = smov 0  }
   0x4 LB: > { %1695 = sst [smem:[#allocation9_spill]] %s1382_s19  ;;  %s1069_s23 = sadd.s32 4294967295, %s1394_s22   ;;  %s1394_s22 = sphi %s1471_s22, %s24_s22   ;;  %s1390_s21 = sphi %s1469_s21, %s1706_s21   ;;  %s1386_s20 = sphi %s1467_s20, %s1705_s20   ;;  %s1382_s19 = sphi %s1465_s19, %s1704_s19   ;;  %s1378_s18 = sphi %s1463_s18, %s1708_s18   ;;  %s1374_s17 = sphi %s1461_s17, %s1707_s17  }
   0x5   : > { %1696 = sst [smem:[#allocation10_spill]] %s1390_s21  ;;  %s1070_s24 = sadd.s32 4294967294, %s1394_s22  }
   0x6   : > { %s36_s25 = sadd.s32 1, %s1390_s21  ;;  %s293_s26 = sadd.s32 1, %s1382_s19 }
   0x7   : > { %p38_p0 = scmp.ge.s32.totalorder %s36_s25, 2  ;;  %p303_p1 = scmp.ne.s32.totalorder %s1382_s19, %s1378_s18 }
   0x8   : > { %p304_p2 = scmp.eq.s32.totalorder %s1069_s23, 1  ;;  %p309_p3 = scmp.ne.s32.totalorder %s1378_s18, %s1374_s17 }
   0x9   : > { %s1710_s25 = smov (%p38_p0, %s36_s25), 0  ;;  %p310_p5 = scmp.eq.s32.totalorder %s1070_s24, 1 }
   0xa   : > { %1697 = sst [smem:[#allocation11_spill]] %s1710_s25  ;;  %p1501_p4 = por %p304_p2, %p303_p1 }
   0xb   : > { %s290_s28 = ssub.s32 %s1390_s21, %s1710_s25  ;;  %p1073_p6 = scmp.ge.s32.totalorder %s1394_s22, 1 }
   0xc   : > { %p291_p7 = scmp.eq.s32.totalorder %s290_s28, 0  ;;  %p1508_p8 = por %p310_p5, %p309_p3 }
   0xd   : > { %p387_p9 = scmp.lt.s32.totalorder %s1394_s22, 3 }
   0xe   : > { %s1699_s29 = scalar_select %p1508_p8, 1, 0 }
   0xf   : > { %s1514_s30 = scalar_select %p291_p7, %s1382_s19, %s293_s26  }
  0x10   : > { %1700 = sst [smem:[#allocation12_spill]] %s1699_s29  ;;  %p388_p10 = pnand %p1073_p6, %p387_p9 }
  0x11   : > { %1701 = sst [smem:[#allocation13_spill]] %s1514_s30  ;;  %s1075_s24 = sshll.u32 (!%p388_p10), %s1386_s20, 1 }
  0x12   : > { %391 = sbr.rel (%p388_p10) target bundleno = 990 (0x3de), region = 64  ;;  %p452_p11 = scmp.lt.s32.totalorder (!%p388_p10), %s1386_s20, 1 }
  0x13   : > { %p446_p12 = scmp.lt.s32.totalorder (!%p388_p10), %s1075_s24, 3  ;;  %s442_s15 = sand.u32 (!%p388_p10), 1, %s1378_s18  }
  0x14   : > { %s1074_s19 = sshll.u32 (!%p388_p10), %s442_s15, 4  ;;  %s1236_s30 = sshll.u32 (!%p388_p10), %s1386_s20, 4 }
  0x15   : > { %s444_s26 = scalar_lea.vmem (!%p388_p10), [#allocation6], %s1074_s19  ;;  %s1336_s19 = scalar_lea.hbm (!%p388_p10), %s1690_s11, 32 }
  0x17   : > { %v1215_v0 = vld [vmem:[%s1682_s3 + $0x38] sm:$0xff]  ;;  %v1214_v2 = vld [vmem:[%s1682_s3 + $0x30] sm:$0xff]  ;;  %v1213_v4 = vld [vmem:[%s1682_s3 + $0x28] sm:$0xff]  ;;  %s1555_s23 = scalar_select %p452_p11, %s1386_s20, 1  ;;  %vm569_vm0 = vcmask 125952   ;;  %vm577_vm1 = vcmask 130048  }
  0x18   : > { %v1225_v1 = vld [vmem:[%s1684_s5 + $0x38] sm:$0xff]  ;;  %553 = vmatpush.bf16.msra.mxu0 %v1215_v0  ;;  %v1224_v3 = vld [vmem:[%s1684_s5 + $0x30] sm:$0xff]  ;;  %v1223_v5 = vld [vmem:[%s1684_s5 + $0x28] sm:$0xff]  ;;  %s1712_s24 = smov (!%p446_p12, %s1075_s24), 3  ;;  %vm572_vm2 = vcmask 7168   ;;  %v1396_v39 = vmov -inf  }
  0x19   : > { %658 = vmatpush.bf16.msra.mxu1 %v1225_v1  ;;  %v1212_v6 = vld [vmem:[%s1682_s3 + $0x20] sm:$0xff]  ;;  %v1211_v8 = vld [vmem:[%s1682_s3 + $0x18] sm:$0xff]  ;;  %v1210_v10 = vld [vmem:[%s1682_s3 + $0x10] sm:$0xff]  ;;  %s1076_s13 = sshll.u32 %s1712_s24, 2  ;;  %s1205_s14 = sshll.u32 %s1555_s23, 3  ;;  %573 = vst.msk [vmem:[#allocation3] sm:$0xff] %vm572_vm2, %v1396_v39 }
  0x1a   : > { %v1222_v7 = vld [vmem:[%s1684_s5 + $0x20] sm:$0xff]  ;;  %v1221_v9 = vld [vmem:[%s1684_s5 + $0x18] sm:$0xff]  ;;  %v1220_v11 = vld [vmem:[%s1684_s5 + $0x10] sm:$0xff]  ;;  %s449_s25 = scalar_lea.vmem %s1679_s0, %s1076_s13  ;;  %s459_s24 = scalar_lea.vmem %s1680_s1, %s1205_s14  ;;  %574 = vst.msk [vmem:[#allocation3 + $0x8] sm:$0xff] %vm572_vm2, %v1396_v39  ;;  %v1397_v51 = vmov 0   ;;  %v1398_v52 = vmov 0.0  }
  0x1b   : > { %v1209_v12 = vld [vmem:[%s1682_s3 + $0x8] sm:$0xff]  ;;  %v1208_v14 = vld [vmem:[%s1682_s3] sm:$0xff]  ;;  %v1233_v37 = vld [vmem:[%s1686_s7 + $0x38] sm:$0xff]  ;;  %s469_s28 = scalar_lea.vmem %s1681_s2, %s1205_s14  ;;  %1297 = vset.pattern.permute.xlu1 %v1397_v51  ;;  %1298 = vset.pattern.permute.xlu0 %v1397_v51  ;;  %578 = vst.msk [vmem:[#allocation5] sm:$0xff] %vm577_vm1, %v1398_v52  ;;  %s948_s14 = scalar_lea.sflag [#allocation7], %s442_s15 }
  0x1c   : > { %554 = vmatpush.bf16.msra.mxu0 %v1214_v2  ;;  %v1219_v13 = vld [vmem:[%s1684_s5 + $0x8] sm:$0xff]  ;;  %v1218_v15 = vld [vmem:[%s1684_s5] sm:$0xff]  ;;  %746 = vmatpush.bf16.msra.mxu2 %v1233_v37  ;;  %v1232_v38 = vld [vmem:[%s1686_s7 + $0x30] sm:$0xff]  ;;  %575 = vst.msk [vmem:[#allocation4] sm:$0xff] %vm572_vm2, %v1398_v52 }
  0x1d   : > { %659 = vmatpush.bf16.msra.mxu1 %v1224_v3  ;;  %v1207_v16 = vld [vmem:[%s449_s25] sm:$0xff]  ;;  %v1231_v40 = vld [vmem:[%s1686_s7 + $0x28] sm:$0xff]  ;;  %v1229_v42 = vld [vmem:[%s1686_s7 + $0x18] sm:$0xff]  ;;  %1299 = vset.pattern.permute.xlu2 %v1397_v51  ;;  %576 = vst.msk [vmem:[#allocation4 + $0x8] sm:$0xff] %vm572_vm2, %v1398_v52  ;;  %s959_s25 = scalar_lea.hbm %s1690_s11, %s1236_s30 }
  0x1e   : > { %v1216_v17 = vld [vmem:[%s459_s24] sm:$0xff]  ;;  %v1228_v43 = vld [vmem:[%s1686_s7 + $0x10] sm:$0xff]  ;;  %v1227_v45 = vld [vmem:[%s1686_s7 + $0x8] sm:$0xff]  ;;  %579 = vst.msk [vmem:[#allocation5 + $0x8] sm:$0xff] %vm577_vm1, %v1398_v52  ;;  %s962_s23 = sshll.u32 %s959_s25, 4  ;;  %s963_s23 = int_to_ptr.hbm [resolvable:$true] %s962_s23 }
  0x1f   : > { %v1300_v18 = vld [vmem:[%s1683_s4] ss:$0 sm:$0xff]  ;;  %s1330_s24 = sshra.s32 %s963_s23, 4  ;;  %s1331_s24 = int_to_ptr.hbm [resolvable:$true] %s1330_s24 }
  0x20   : > { %555 = vmatpush.bf16.msra.mxu0 %v1213_v4  ;;  %v1301_v22 = vld [vmem:[%s1685_s6] ss:$0 sm:$0xff]  ;;  %747 = vmatpush.bf16.msra.mxu2 %v1232_v38  ;;  %v797_v53 = vld [vmem:[#allocation3] sm:$0xff]  ;;  %s1332_s20 = scalar_lea.hbm %s1331_s24, 16  ;;  %p1337_p2 = scmp.lt.s32.totalorder %s1331_s24, %s1690_s11 }
  0x21   : > { %660 = vmatpush.bf16.msra.mxu1 %v1223_v5  ;;  %v1230_v41 = vld [vmem:[%s1686_s7 + $0x20] sm:$0xff]  ;;  %v798_v58 = vld [vmem:[#allocation3 + $0x8] sm:$0xff]  ;;  %p1333_p13 = scmp.ne.s32.totalorder %s1331_s24, %s1332_s20  ;;  %p1338_p3 = scmp.lt.s32.totalorder %s1336_s19, %s1332_s20 }
  0x22   : > { %v1226_v47 = vld [vmem:[%s1686_s7] sm:$0xff]  ;;  %v844_v38 = vld [vmem:[#allocation5] sm:$0xff] }
  0x23   : > { %v1217_v48 = vld [vmem:[%s469_s28] sm:$0xff]  ;;  %s960_s28 = sshll.u32 %s444_s26, 4  ;;  %p1334_p0 = pnand %p1333_p13, %p1501_p4  ;;  %s961_s28 = int_to_ptr.vmem [resolvable:$true] %s960_s28 }
  0x24   : > { %556 = vmatpush.bf16.msra.mxu0 %v1212_v6  ;;  %748 = vmatpush.bf16.msra.mxu2 %v1231_v40  ;;  %v1302_v2 = vld [vmem:[%s1687_s8] ss:$0 sm:$0xff]  ;;  %p1339_p5 = por %p1338_p3, %p1337_p2 }
  0x25   : > { %661 = vmatpush.bf16.msra.mxu1 %v1222_v7  ;;  %p1335_p1 = pneg %p1334_p0 }
  0x27   : > { %p1340_p6 = pnand %p1339_p5, %p1335_p1 }
  0x28   : > { %557 = vmatpush.bf16.msra.mxu0 %v1211_v8  ;;  %749 = vmatpush.bf16.msra.mxu2 %v1230_v41 }
  0x29   : > { %662 = vmatpush.bf16.msra.mxu1 %v1221_v9 }
  0x2c   : > { %558 = vmatpush.bf16.msra.mxu0 %v1210_v10  ;;  %750 = vmatpush.bf16.msra.mxu2 %v1229_v42 }
  0x2d   : > { %663 = vmatpush.bf16.msra.mxu1 %v1220_v11 }
  0x30   : > { %559 = vmatpush.bf16.msra.mxu0 %v1209_v12  ;;  %751 = vmatpush.bf16.msra.mxu2 %v1228_v43  ;;  %v845_v43 = vld [vmem:[#allocation5 + $0x8] sm:$0xff] }
  0x31   : > { %664 = vmatpush.bf16.msra.mxu1 %v1219_v13 }
  0x34   : > { %560 = vmatpush.bf16.msra.mxu0 %v1208_v14  ;;  %752 = vmatpush.bf16.msra.mxu2 %v1227_v45 }
  0x35   : > { %665 = vmatpush.bf16.msra.mxu1 %v1218_v15 }
  0x37   : > { %561 = vmatmul.bf16.vlgmr.msra.gmra.mxu0 %v1207_v16 }
  0x38   : > { %666 = vmatmul.bf16.vlgmr.msra.gmra.mxu1 %v1216_v17  ;;  %753 = vmatpush.bf16.msra.mxu2 %v1226_v47 }
  0x3b   : > { %754 = vmatmul.bf16.vlgmr.msra.gmra.mxu2 %v1217_v48  ;;  %v1235_v48 = vld [vmem:[%s1688_s9] sm:$0xff] }
  0xb4   : > { %v562_v19 = vpop.f32.mrf.mxu0 }
  0xb5   : > { %v667_v20 = vpop.f32.mrf.mxu1  ;;  %v563_v21 = vadd.f32 %v1300_v18, %v562_v19 }
  0xb6   : > { %v668_v24 = vadd.f32 %v1301_v22, %v667_v20 }
  0xb7   : > { %v567_v23 = vpack.c.bf16 %v563_v21, %v563_v21 }
  0xb8   : > { %v760_v27 = vpack.c.bf16 %v668_v24, %v668_v24 }
  0xb9   : > { %570 = vst.msk [vmem:[#allocation2] sm:$0xf] %vm569_vm0, %v567_v23 }
  0xba   : > { %v773_v32 = vunpack.c.l.b16 %v760_v27 }
  0xbc   : > { %v564_v25 = vpop.f32.mrf.mxu0 }
  0xbd   : > { %v669_v26 = vpop.f32.mrf.mxu1  ;;  %v565_v28 = vadd.f32 %v1300_v18, %v564_v25 }
  0xbe   : > { %v670_v29 = vadd.f32 %v1301_v22, %v669_v26  ;;  %v755_v1 = vpop.f32.mrf.mxu2  ;;  %v829_v26 = vld [vmem:[#allocation4] sm:$0xff] }
  0xbf   : > { %v568_v30 = vpack.c.bf16 %v565_v28, %v565_v28  ;;  %v756_v4 = vadd.f32 %v1302_v2, %v755_v1 }
  0xc0   : > { %v761_v31 = vpack.c.bf16 %v670_v29, %v670_v29 }
  0xc1   : > { %571 = vst.msk [vmem:[#allocation2 + $0x4] sm:$0xf] %vm569_vm0, %v568_v30  ;;  %v762_v6 = vpack.c.bf16 %v756_v4, %v756_v4  ;;  %v830_v30 = vld [vmem:[#allocation4 + $0x8] sm:$0xff] }
  0xc2   : > { %v774_v33 = vunpack.c.l.b16 %v761_v31 }
  0xc3   : > { %v867_v8 = vunpack.c.l.b16 %v762_v6 }
  0xc4   : > { %v775_v34 = vpack.c.b16 %v774_v33, %v773_v32 }
  0xc6   : > { %v781_v35 = vsel %vm577_vm1, %v775_v34, 0  ;;  %v757_v3 = vpop.f32.mrf.mxu2 }
  0xc7   : > { %790 = vmatpush.bf16.xpose.msra.mxu3 %v781_v35  ;;  %v758_v5 = vadd.f32 %v1302_v2, %v757_v3 }
  0xc8   : > { %v1234_v36 = vld [vmem:[#allocation2] sm:$0xff] }
  0xc9   : > { %v763_v7 = vpack.c.bf16 %v758_v5, %v758_v5 }
  0xcb   : > { %v868_v9 = vunpack.c.l.b16 %v763_v7 }
  0xcd   : > { %v869_v10 = vpack.c.b16 %v868_v9, %v867_v8 }
  0xce   : > { %1193 = vmatmul.msk.bf16.vlgmr.msra.gmra.mxu3 %vm577_vm1, %v1234_v36 }
  0xcf   : > { %881 = vmatpush.bf16.msrb.mxu3 %v869_v10 }
  0xd3   : > { %938 = vmatpush.bf16.msra.mxu3 %v1235_v48 }
 0x151   : > { %v792_v44 = vpop.f32.mrf.mxu3 }
 0x152   : > { %v799_v46 = vsel %vm577_vm1, %v792_v44, -inf }
 0x153   : > { %800 = vmax.xlane.f32.xlu0 %v799_v46 }
 0x159   : > { %v794_v49 = vpop.f32.mrf.mxu3 }
 0x15a   : > { %v802_v50 = vsel %vm577_vm1, %v794_v49, -inf }
 0x15b   : > { %803 = vmax.xlane.f32.xlu0 %v802_v50 }
 0x1c6   : > { %v801_v54 = vpop.xlane.xlu0 %800 }
 0x1c7   : > { %v805_v55 = vmax.f32 %v797_v53, %v801_v54 }
 0x1c9   : > { %v807_v56 = vsub.f32 %v797_v53, %v805_v55  ;;  %892 = vst.msk [vmem:[#allocation3] sm:$0xff] %vm572_vm2, %v805_v55  ;;  %815 = vperm.xlu1 %1297, %v805_v55  }
 0x1cb   : > { %v809_v57 = vmul.f32 1.442695, %v807_v56  ;;  %v1303_v56 = vld [vmem:[%s1689_s10] ss:$0 sm:$0xff] }
 0x1cd   : > { %1304 = vpow2.f32 %v809_v57 }
 0x1ce   : > { %v804_v59 = vpop.xlane.xlu0 %803 }
 0x1cf   : > { %v806_v60 = vmax.f32 %v798_v58, %v804_v59 }
 0x1d1   : > { %v808_v61 = vsub.f32 %v798_v58, %v806_v60  ;;  %893 = vst.msk [vmem:[#allocation3 + $0x8] sm:$0xff] %vm572_vm2, %v806_v60  ;;  %820 = vperm.xlu1 %1297, %v806_v60  }
 0x1d3   : > { %v1305_v62 = vpop.eup %1304  ;;  %v811_v63 = vmul.f32 1.442695, %v808_v61 }
 0x1d4   : > { %848 = vperm.xlu0 %1298, %v1305_v62   ;;  %v831_v27 = vmul.f32 %v1305_v62, %v829_v26 }
 0x1d5   : > { %1306 = vpow2.f32 %v811_v63 }
 0x1db   : > { %v1307_v0 = vpop.eup %1306 }
 0x1dc   : > { %853 = vperm.xlu1 %1297, %v1307_v0   ;;  %v832_v31 = vmul.f32 %v1307_v0, %v830_v30 }
 0x23b   : > { %v816_v11 = vpop.permute.xlu1 %815 }
 0x23c   : > { %v823_v12 = vsub.f32 %v792_v44, %v816_v11 }
 0x23e   : > { %v825_v13 = vmul.f32 1.442695, %v823_v12 }
 0x240   : > { %1308 = vpow2.f32 %v825_v13 }
 0x243   : > { %v821_v14 = vpop.permute.xlu1 %820 }
 0x244   : > { %v824_v15 = vsub.f32 %v794_v49, %v821_v14 }
 0x246   : > { %v1309_v16 = vpop.eup %1308  ;;  %v827_v17 = vmul.f32 1.442695, %v824_v15  ;;  %v849_v39 = vpop.permute.xlu0 %848 }
 0x247   : > { %v833_v18 = vsel %vm577_vm1, %v1309_v16, 0.0  ;;  %v858_v19 = vpack.c.bf16 %v1309_v16, %v1309_v16  ;;  %v856_v40 = vmul.f32 %v849_v39, %v844_v38 }
 0x248   : > { %1310 = vpow2.f32 %v827_v17  ;;  %834 = vadd.xlane.f32.xlu2 %v833_v18 }
 0x249   : > { %v862_v23 = vunpack.c.l.b16 %v858_v19 }
 0x24e   : > { %v1311_v20 = vpop.eup %1310  ;;  %v854_v44 = vpop.permute.xlu1 %853 }
 0x24f   : > { %v859_v21 = vpack.c.bf16 %v1311_v20, %v1311_v20  ;;  %v836_v22 = vsel %vm577_vm1, %v1311_v20, 0.0  ;;  %v857_v45 = vmul.f32 %v854_v44, %v845_v43 }
 0x250   : > { %837 = vadd.xlane.f32.xlu2 %v836_v22 }
 0x251   : > { %v863_v24 = vunpack.c.l.b16 %v859_v21 }
 0x253   : > { %v864_v25 = vpack.c.b16 %v863_v24, %v862_v23 }
 0x255   : > { %1194 = vmatmul.msk.bf16.vlgmr.msrb.gmra.mxu3 %vm577_vm1, %v864_v25 }
 0x2bb   : > { %v835_v28 = vpop.xlane.xlu2 %834 }
 0x2bc   : > { %v839_v29 = vadd.f32 %v835_v28, %v831_v27 }
 0x2be   : > { %842 = vst.msk [vmem:[#allocation4] sm:$0xff] %vm572_vm2, %v839_v29 }
 0x2c3   : > { %v838_v32 = vpop.xlane.xlu2 %837 }
 0x2c4   : > { %v840_v33 = vadd.f32 %v838_v32, %v832_v31 }
 0x2c5   : > { %v897_v34 = vld [vmem:[#allocation4] sm:$0xff] }
 0x2c6   : > { %843 = vst.msk [vmem:[#allocation4 + $0x8] sm:$0xff] %vm572_vm2, %v840_v33  ;;  %1312 = vrcp.f32 %v897_v34 }
 0x2cc   : > { %v1313_v35 = vpop.eup %1312 }
 0x2cd   : > { %905 = vperm.xlu2 %1299, %v1313_v35   ;;  %v898_v36 = vld [vmem:[#allocation4 + $0x8] sm:$0xff] }
 0x2ce   : > { %1314 = vrcp.f32 %v898_v36 }
 0x2d4   : > { %v1315_v37 = vpop.eup %1314 }
 0x2d5   : > { %910 = vperm.xlu1 %1297, %v1315_v37  }
 0x2d8   : > { %v883_v41 = vpop.f32.mrf.mxu3 }
 0x2d9   : > { %v888_v42 = vadd.f32 %v883_v41, %v856_v40 }
 0x2db   : > { %890 = vst.msk [vmem:[#allocation5] sm:$0xff] %vm577_vm1, %v888_v42 }
 0x2e0   : > { %v885_v46 = vpop.f32.mrf.mxu3 }
 0x2e1   : > { %v889_v47 = vadd.f32 %v885_v46, %v857_v45 }
 0x2e2   : > { %v901_v50 = vld [vmem:[#allocation5] sm:$0xff] }
 0x2e3   : > { %891 = vst.msk [vmem:[#allocation5 + $0x8] sm:$0xff] %vm577_vm1, %v889_v47 }
 0x2ea   : > { %v902_v51 = vld [vmem:[#allocation5 + $0x8] sm:$0xff] }
 0x327   : > { %v906_v49 = vpop.permute.xlu2 %905 }
 0x328   : > { %v913_v53 = vmul.f32 %v906_v49, %v901_v50 }
 0x347   : > { %v911_v52 = vpop.permute.xlu1 %910 }
 0x348   : > { %v914_v54 = vmul.f32 %v911_v52, %v902_v51 }
 0x34a   : > { %v915_v55 = vpack.c.bf16 %v914_v54, %v913_v53 }
 0x34c   : > { %1199 = vmatmul.msk.bf16.vlgmr.msra.gmra.mxu3 %vm577_vm1, %v915_v55 }
 0x3cf   : > { %v940_v57 = vpop.f32.mrf.mxu3 }
 0x3d0   : > { %v941_v58 = vadd.f32 %v1303_v56, %v940_v57 }
 0x3d2   : > { %945 = vst [vmem:[%s444_s26] sm:$0xff] %v941_v58 }
 0x3d7   : > { %v942_v59 = vpop.f32.mrf.mxu3 }
 0x3d8   : > { %v943_v60 = vadd.f32 %v1303_v56, %v942_v59 }
 0x3da   : > { %946 = vst [vmem:[%s444_s26 + $0x8] sm:$0xff] %v943_v60 }
 0x3db   : > { %1343 = shalt.err (!%p1340_p6)
}
 0x3dc   : > { %s1399_s15 = smov 128   ;;  %s1400_s13 = smov 8  }
 0x3dd   : > { %1237 = dma.vmem_to_hbm [thread:$0]  (%p1501_p4), %s961_s28, 256, %s963_s23, %s948_s14, %s1399_s15, %s1399_s15, %s1400_s13  }
 0x3de PF: > { %p1243_p7 = scmp.ge.s32.totalorder %s1394_s22, 2  ;;  %s977_s25 = sand.u32 1, %s1374_s17  }
 0x3df   : > { %s978_s26 = scalar_lea.sflag [#allocation7], %s977_s25 }
 0x3e0   : > { %p1240_p9 = pnand %p1243_p7, %p1508_p8 }
 0x3e2   : > { %p1241_p10 = pneg %p1240_p9 }
 0x3e4   : > { %1369 = dma.done.wait (%p1241_p10), %s978_s26, 256  }
 0x3e5   : > { %1371 = vsyncadd (%p1241_p10), %s978_s26, 4294967040  ;;  %s24_s22 = sadd.s32 1, %s1394_s22   ;;  %s1703_s24 = sld [smem:[#allocation9_spill]] }
 0x3e6   : > { %p21_p11 = scmp.ge.s32.totalorder %s24_s22, 4   ;;  %s1704_s19 = sld [smem:[#allocation13_spill]] }
 0x3e7   : > { %s1705_s20 = sld [smem:[#allocation10_spill]]  ;;  %s1707_s17 = smov %s1378_s18 }
 0x3e8   : > { %s1706_s21 = sld [smem:[#allocation11_spill]]  ;;  %23 = sbr.rel (!%p21_p11) target bundleno = 4 (0x4), region = 113 }
 0x3eb   : > { %s1708_s18 = smov %s1703_s24 }
 0x3ed   :  { %984 = vsyncpa [#allocation7], 1 }
 0x3ee   :  { %986 = vsyncpa [#allocation7 + $0x1], 1 }

</bundles_post_ra>
